<compile_context>
chip_gen: v7x
topology: tpu7x:2x2x1
jax: 0.10.0
libtpu: 0.0.40
codegen_flags: <defaults>
</compile_context>

<pallas_src>
import functools

import jax
import jax.numpy as jnp
from jax.experimental import pallas as pl
from jax.experimental.pallas import tpu as pltpu


def _se_kernel(x_ref, w1t_ref, w2t_ref, y_ref, acc_ref, *,
               hw_total, t_hw, chunk, grid_hw, rem):
    # x_ref:   (tb, c, t_hw)   native dtype
    # w1t_ref: (c, hidden)     (W1.T;  torch W1 is (hidden, c))
    # w2t_ref: (hidden, c)     (W2.T;  torch W2 is (c, hidden))
    # y_ref:   (tb, c)
    # acc_ref: (tb, c, chunk)  f32 lane-shaped pooled-sum accumulator
    j = pl.program_id(1)
    last_j = grid_hw - 1          # static
    n_chunks = t_hw // chunk      # static

    @pl.when(j == 0)
    def _():
        acc_ref[...] = jnp.zeros_like(acc_ref)

    def accumulate(valid_lanes):
        # valid_lanes: static Python int; == t_hw for full tiles, == rem for the
        # ragged last tile.  Pure element-wise vreg adds; no XLU work here.
        partial = None
        for k in range(n_chunks):
            lo = k * chunk
            if lo >= valid_lanes:
                break                                     # fully OOB chunk: skip load
            xc = x_ref[:, :, lo:lo + chunk].astype(jnp.float32)
            if lo + chunk > valid_lanes:                  # single ragged chunk
                lane = jax.lax.broadcasted_iota(jnp.int32, (1, 1, chunk), 2)
                xc = jnp.where(lane < (valid_lanes - lo), xc, 0.0)   # select, not mul
            partial = xc if partial is None else partial + xc
        acc_ref[...] += partial

    if rem:
        # Only the last HW step pays for masking; all other steps are unmasked.
        @pl.when(j < last_j)
        def _():
            accumulate(t_hw)

        @pl.when(j == last_j)
        def _():
            accumulate(rem)
    else:
        accumulate(t_hw)

    @pl.when(j == last_j)
    def _():
        # Single cross-lane reduce + tiny MLP + sigmoid, once per batch tile.
        pooled = jnp.sum(acc_ref[...], axis=-1) * jnp.float32(1.0 / hw_total)  # (tb, c)
        w1 = w1t_ref[...]
        w2 = w2t_ref[...]
        if w1.dtype == jnp.bfloat16:
            lhs1 = pooled.astype(jnp.bfloat16)            # bf16-native MXU operands
        else:
            lhs1 = pooled
            w1 = w1.astype(jnp.float32)
            w2 = w2.astype(jnp.float32)
        h = jnp.maximum(jnp.dot(lhs1, w1, preferred_element_type=jnp.float32), 0.0)
        lhs2 = h.astype(jnp.bfloat16) if w2.dtype == jnp.bfloat16 else h
        z = jnp.dot(lhs2, w2, preferred_element_type=jnp.float32)
        y_ref[...] = jax.nn.sigmoid(z).astype(y_ref.dtype)


def _pick_tb(b):
    """Batch tile: multiple of 8 (output BlockSpec sublane rule) that divides b,
    preferring >= 2 batch tiles so the 'parallel' axis can shard across cores.
    Falls back to the full batch (block dim == full dim is always legal)."""
    if b % 8 != 0:
        return b
    for cand in (16, 8):
        if b % cand == 0 and b // cand >= 2:
            return cand
    return 8


def _pick_t_hw(hw, tb, c, itemsize):
    """Lane-dense HW tile, multiple of 128 (unless it covers the full extent),
    sized against a ~2 MiB per-buffer budget (safe for v5e scoped default and
    v7x's 64 MiB physical VMEM)."""
    budget_per_buf = 2 * 1024 * 1024
    max_lanes = max(128, budget_per_buf // max(1, tb * c * itemsize))
    max_lanes = (max_lanes // 128) * 128
    if hw <= max_lanes:
        return hw
    for cand in (4096, 2048, 1024, 512, 256, 128):
        if cand <= max_lanes:
            return cand
    return 128


def se_layer(x, w1, w2):
    """x: (b, c, H, W) NCHW (native dtype).
       w1: (c//r, c), w2: (c, c//r)  -- torch nn.Linear weight layout, bias=False."""
    b, c, H, W = x.shape
    hidden = w1.shape[0]
    hw = H * W

    x_flat = x.reshape(b, c, hw)               # metadata reshape; native dtype
    w1t = jnp.transpose(w1)                    # (c, hidden)
    w2t = jnp.transpose(w2)                    # (hidden, c)

    itemsize = jnp.dtype(x.dtype).itemsize
    min_t_hw = 1024 if itemsize < 4 else 512   # keep HBM runs long (esp. bf16)

    tb = _pick_tb(b)
    t_hw = _pick_t_hw(hw, tb, c, itemsize)
    # Couple tb / t_hw: shrink the batch tile before letting the lane tile shrink.
    while t_hw < min_t_hw and t_hw < hw and tb > 8 and tb % 16 == 0:
        tb //= 2
        t_hw = _pick_t_hw(hw, tb, c, itemsize)
    # Note: for very large channel counts (C >= ~1024) a channel grid axis would
    # keep t_hw >= 512; not needed for this module's typical sizes.

    grid_b = pl.cdiv(b, tb)
    grid_hw = pl.cdiv(hw, t_hw)
    rem = hw - (grid_hw - 1) * t_hw
    rem = 0 if rem == t_hw else rem            # 0 => no ragged last tile
    chunk = 128 if t_hw % 128 == 0 else t_hw   # lane width of the f32 accumulator

    kernel = functools.partial(_se_kernel, hw_total=hw, t_hw=t_hw, chunk=chunk,
                               grid_hw=grid_hw, rem=rem)

    # Deeper pipelining only pays when the HW axis is actually tiled (small blocks
    # expose the ~0.35 us per-step overhead).
    x_index_map = lambda i, j: (i, 0, j)
    if grid_hw >= 3:
        try:
            x_spec = pl.BlockSpec((tb, c, t_hw), x_index_map,
                                  pipeline_mode=pl.Buffered(3))
        except (TypeError, AttributeError):
            x_spec = pl.BlockSpec((tb, c, t_hw), x_index_map)
    else:
        x_spec = pl.BlockSpec((tb, c, t_hw), x_index_map)

    cost = pl.CostEstimate(
        flops=4 * b * c * hidden + b * c * hw,
        transcendentals=b * c,
        bytes_accessed=(x_flat.size * itemsize
                        + (w1.size + w2.size) * jnp.dtype(w1.dtype).itemsize
                        + b * c * itemsize),
    )

    y = pl.pallas_call(
        kernel,
        out_shape=jax.ShapeDtypeStruct((b, c), x.dtype),
        grid_spec=pltpu.PrefetchScalarGridSpec(
            num_scalar_prefetch=0,
            grid=(grid_b, grid_hw),
            in_specs=[
                x_spec,
                pl.BlockSpec((c, hidden), lambda i, j: (0, 0)),   # resident weights
                pl.BlockSpec((hidden, c), lambda i, j: (0, 0)),   # resident weights
            ],
            out_specs=pl.BlockSpec((tb, c), lambda i, j: (i, 0)),
            scratch_shapes=[pltpu.VMEM((tb, c, chunk), jnp.float32)],
        ),
        compiler_params=pltpu.CompilerParams(
            dimension_semantics=("parallel", "arbitrary"),
            vmem_limit_bytes=32 * 1024 * 1024),
        cost_estimate=cost,
    )(x_flat, w1t, w2t)

    return y.reshape(b, c, 1, 1)


def se_layer_ref(x, w1, w2):
    """Pure-JAX reference matching the PyTorch forward."""
    b, c, H, W = x.shape
    pooled = jnp.mean(x.astype(jnp.float32), axis=(2, 3))      # (b, c)
    h = jnp.maximum(pooled @ w1.astype(jnp.float32).T, 0.0)
    z = h @ w2.astype(jnp.float32).T
    return jax.nn.sigmoid(z).astype(x.dtype).reshape(b, c, 1, 1)


def _run_case(key, b, c, H, W, reduction=16, dtype=jnp.float32, tol=1e-4):
    hidden = max(1, c // reduction)
    kx, k1, k2 = jax.random.split(key, 3)
    x = jax.random.normal(kx, (b, c, H, W), dtype=jnp.float32).astype(dtype)
    w1 = (jax.random.normal(k1, (hidden, c), dtype=jnp.float32) * 0.1).astype(dtype)
    w2 = (jax.random.normal(k2, (c, hidden), dtype=jnp.float32) * 0.1).astype(dtype)

    out = jax.block_until_ready(se_layer(x, w1, w2))
    ref = jax.block_until_ready(se_layer_ref(x, w1, w2))
    assert out.shape == (b, c, 1, 1), out.shape
    err = float(jnp.max(jnp.abs(out.astype(jnp.float32) - ref.astype(jnp.float32))))
    assert err < tol, (b, c, H, W, str(dtype), err)


if __name__ == "__main__":
    key = jax.random.PRNGKey(0)
    k0, k1, k2, k3 = jax.random.split(key, 4)
    # Small primary case consistent with the module (c divisible by reduction=16).
    _run_case(k0, b=2, c=64, H=16, W=16)
    # Tiled HW reduction with a ragged last tile (hw=12544, t_hw=2048, rem=256).
    _run_case(k1, b=2, c=128, H=112, W=112)
    # Multiple batch tiles (tb=8 -> 2 'parallel' grid steps) -> accumulator re-init path.
    _run_case(k2, b=16, c=64, H=16, W=16)
    # bf16 inputs/weights: exercises bf16 MXU operands in the finalize step.
    _run_case(k3, b=2, c=64, H=56, W=56, dtype=jnp.bfloat16, tol=3e-2)
    print("KERNEL_OK")
</pallas_src>

<mosaic_0001>
module attributes {stable_mosaic.version = 11 : i64} {
  func.func @_se_kernel(%arg0: i32, %arg1: i32, %arg2: memref<2x64x256xf32, #tpu.memory_space<vmem>>, %arg3: memref<64x4xf32, #tpu.memory_space<vmem>>, %arg4: memref<4x64xf32, #tpu.memory_space<vmem>>, %arg5: memref<2x64xf32, #tpu.memory_space<vmem>>, %arg6: memref<2x64x128xf32, #tpu.memory_space<vmem>>) attributes {dimension_semantics = [#tpu.dimension_semantics<parallel>, #tpu.dimension_semantics<arbitrary>], iteration_bounds = array<i64: 1, 1>, scalar_prefetch = 0 : i64, scratch_operands = 1 : i64, tpu.core_type = #tpu.core_type<tc>, window_params = [{transform_indices = @transform_0, window_bounds = array<i64: 2, 64, 256>}, {pipeline_mode = #tpu.pipeline_mode<synchronous>, transform_indices = @transform_1, window_bounds = array<i64: 64, 4>}, {pipeline_mode = #tpu.pipeline_mode<synchronous>, transform_indices = @transform_2, window_bounds = array<i64: 4, 64>}, {transform_indices = @transform_3, window_bounds = array<i64: 2, 64>}]} {
    %c0_i32 = arith.constant 0 : i32
    %0 = arith.cmpi eq, %arg1, %c0_i32 : i32
    %1 = arith.extui %0 : i1 to i32
    %c0_i32_0 = arith.constant 0 : i32
    %2 = arith.cmpi ne, %1, %c0_i32_0 : i32
    scf.if %2 {
      %cst = arith.constant 0.000000e+00 : f32
      %12 = vector.broadcast %cst : f32 to vector<2x64x128xf32>
      %c0_13 = arith.constant 0 : index
      %c0_14 = arith.constant 0 : index
      %c0_15 = arith.constant 0 : index
      %13 = vector.load %arg6[%c0_13, %c0_14, %c0_15] : memref<2x64x128xf32, #tpu.memory_space<vmem>>, vector<2x64x128xf32>
      tpu.vector_store %arg6[%c0_13, %c0_14, %c0_15], %12 {strides = array<i32>} : memref<2x64x128xf32, #tpu.memory_space<vmem>>, vector<2x64x128xf32>,
    } else {
    }
    %c0 = arith.constant 0 : index
    %c0_1 = arith.constant 0 : index
    %c0_2 = arith.constant 0 : index
    %3 = vector.load %arg2[%c0, %c0_1, %c0_2] : memref<2x64x256xf32, #tpu.memory_space<vmem>>, vector<2x64x128xf32>
    %c0_3 = arith.constant 0 : index
    %c0_4 = arith.constant 0 : index
    %c128 = arith.constant 128 : index
    %4 = vector.load %arg2[%c0_3, %c0_4, %c128] : memref<2x64x256xf32, #tpu.memory_space<vmem>>, vector<2x64x128xf32>
    %5 = arith.addf %3, %4 : vector<2x64x128xf32>
    %c0_5 = arith.constant 0 : index
    %c0_6 = arith.constant 0 : index
    %c0_7 = arith.constant 0 : index
    %6 = vector.load %arg6[%c0_5, %c0_6, %c0_7] : memref<2x64x128xf32, #tpu.memory_space<vmem>>, vector<2x64x128xf32>
    %7 = arith.addf %6, %5 : vector<2x64x128xf32>
    %c0_8 = arith.constant 0 : index
    %c0_9 = arith.constant 0 : index
    %c0_10 = arith.constant 0 : index
    %8 = vector.load %arg6[%c0_8, %c0_9, %c0_10] : memref<2x64x128xf32, #tpu.memory_space<vmem>>, vector<2x64x128xf32>
    tpu.vector_store %arg6[%c0_8, %c0_9, %c0_10], %7 {strides = array<i32>} : memref<2x64x128xf32, #tpu.memory_space<vmem>>, vector<2x64x128xf32>,
    %c0_i32_11 = arith.constant 0 : i32
    %9 = arith.cmpi eq, %arg1, %c0_i32_11 : i32
    %10 = arith.extui %9 : i1 to i32
    %c0_i32_12 = arith.constant 0 : i32
    %11 = arith.cmpi ne, %10, %c0_i32_12 : i32
    scf.if %11 {
      %c0_13 = arith.constant 0 : index
      %c0_14 = arith.constant 0 : index
      %c0_15 = arith.constant 0 : index
      %12 = vector.load %arg6[%c0_13, %c0_14, %c0_15] : memref<2x64x128xf32, #tpu.memory_space<vmem>>, vector<2x64x128xf32>
      %cst = arith.constant dense<0.000000e+00> : vector<2x64xf32>
      %13 = vector.multi_reduction <add>, %12, %cst [2] : vector<2x64x128xf32> to vector<2x64xf32>
      %cst_16 = arith.constant 3.906250e-03 : f32
      %14 = vector.broadcast %cst_16 : f32 to vector<2x64xf32>
      %15 = arith.mulf %13, %14 : vector<2x64xf32>
      %c0_17 = arith.constant 0 : index
      %c0_18 = arith.constant 0 : index
      %16 = vector.load %arg3[%c0_17, %c0_18] : memref<64x4xf32, #tpu.memory_space<vmem>>, vector<64x4xf32>
      %c0_19 = arith.constant 0 : index
      %c0_20 = arith.constant 0 : index
      %17 = vector.load %arg4[%c0_19, %c0_20] : memref<4x64xf32, #tpu.memory_space<vmem>>, vector<4x64xf32>
      %cst_21 = arith.constant dense<0.000000e+00> : vector<2x4xf32>
      %18 = tpu.matmul %15, %16, %cst_21 {dimension_numbers = #tpu.dot_dimension_numbers<[1], [0], [0], [1], [0, 0, 1, 1], [], []>} : vector<2x64xf32>, vector<64x4xf32>, vector<2x4xf32> -> vector<2x4xf32>
      %cst_22 = arith.constant 0.000000e+00 : f32
      %19 = vector.broadcast %cst_22 : f32 to vector<2x4xf32>
      %20 = arith.maximumf %18, %19 : vector<2x4xf32>
      %cst_23 = arith.constant dense<0.000000e+00> : vector<2x64xf32>
      %21 = tpu.matmul %20, %17, %cst_23 {dimension_numbers = #tpu.dot_dimension_numbers<[1], [0], [0], [1], [0, 0, 1, 1], [], []>} : vector<2x4xf32>, vector<4x64xf32>, vector<2x64xf32> -> vector<2x64xf32>
      %22 = arith.negf %21 : vector<2x64xf32>
      %23 = math.exp %22 : vector<2x64xf32>
      %cst_24 = arith.constant 1.000000e+00 : f32
      %24 = vector.broadcast %cst_24 : f32 to vector<2x64xf32>
      %25 = arith.addf %24, %23 : vector<2x64xf32>
      %26 = arith.divf %24, %25 : vector<2x64xf32>
      %c0_25 = arith.constant 0 : index
      %c0_26 = arith.constant 0 : index
      %27 = vector.load %arg5[%c0_25, %c0_26] : memref<2x64xf32, #tpu.memory_space<vmem>>, vector<2x64xf32>
      tpu.vector_store %arg5[%c0_25, %c0_26], %26 {strides = array<i32>} : memref<2x64xf32, #tpu.memory_space<vmem>>, vector<2x64xf32>,
    } else {
    }
    return
  }
  func.func @transform_0(%arg0: i32, %arg1: i32) -> (i32, i32, i32) {
    %c0_i32 = arith.constant 0 : i32
    %c0_i32_0 = arith.constant 0 : i32
    return %arg0, %c0_i32, %arg1 : i32, i32, i32
  }
  func.func @transform_1(%arg0: i32, %arg1: i32) -> (i32, i32) {
    %c0_i32 = arith.constant 0 : i32
    %c0_i32_0 = arith.constant 0 : i32
    %c0_i32_1 = arith.constant 0 : i32
    return %c0_i32, %c0_i32_0 : i32, i32
  }
  func.func @transform_2(%arg0: i32, %arg1: i32) -> (i32, i32) {
    %c0_i32 = arith.constant 0 : i32
    %c0_i32_0 = arith.constant 0 : i32
    %c0_i32_1 = arith.constant 0 : i32
    return %c0_i32, %c0_i32_0 : i32, i32
  }
  func.func @transform_3(%arg0: i32, %arg1: i32) -> (i32, i32) {
    %c0_i32 = arith.constant 0 : i32
    %c0_i32_0 = arith.constant 0 : i32
    return %arg0, %c0_i32 : i32, i32
  }
}

</mosaic_0001>

<bundles_post_ra>
// kernel: tpu_custom_call.1
= control target key start
LH: loop header
LB: loop body
LE: loop exit
PB: predicated region body
PF: predicated region fallthrough
CT: control target
= control target key end

     0   :  { %8 = vsyncpa [#allocation4], 0  ;;  %s708_s0 = inlined_call_operand.hbm [shape: f32[2,64,256], index: 0, kind: input, shape index: {}]   ;;  %s709_s1 = inlined_call_operand.vmem [shape: f32[64,4], index: 1, kind: input, shape index: {}]   ;;  %s710_s2 = inlined_call_operand.vmem [shape: f32[4,64], index: 2, kind: input, shape index: {}]   ;;  %s711_s3 = inlined_call_operand.hbm [shape: f32[2,64], index: 3, kind: output, shape index: {}]  }
   0x1   :  { %9 = vsyncpa [#allocation5], 0  ;;  %s618_s12 = smov [#allocation3]   ;;  %s570_s16 = scalar_lea.hbm %s708_s0, 4096 }
   0x2   :  { %s15_s13 = sshll.u32 %s618_s12, 4  ;;  %p571_p0 = scmp.ne.s32.totalorder %s708_s0, %s570_s16  ;;  %s16_s13 = int_to_ptr.vmem [resolvable:$true] %s15_s13 }
   0x3   :  { %p574_p1 = scmp.lt.u32.totalorder %s570_s16, %s708_s0 }
   0x5   :  { %p576_p2 = pnand %p574_p1, %p571_p0 }
   0x7   :  { %579 = shalt.err (!%p576_p2)
}
   0x8   :  { %s580_s21 = scalar_lea.vmem %s16_s13, 4096  ;;  %p585_p4 = scmp.lt.s32.totalorder %s16_s13, %s16_s13 }
   0x9   :  { %p581_p3 = scmp.ne.s32.totalorder %s16_s13, %s580_s21  ;;  %p586_p5 = scmp.lt.s32.totalorder %s580_s21, %s580_s21 }
   0xb   :  { %p587_p6 = por %p586_p5, %p585_p4 }
   0xd   :  { %p588_p7 = pnand %p587_p6, %p581_p3 }
   0xf   :  { %591 = shalt.err (!%p588_p7)
}
  0x10   :  { %s619_s22 = smov 256   ;;  %s620_s23 = smov 16  }
  0x11   :  { %21 = dma.hbm_to_vmem [thread:$0]  %s708_s0, 4096, %s16_s13, [#allocation4], %s619_s22, %s619_s22, %s620_s23  }
  0x12   :  { %614 = dma.done.wait [#allocation4], 4096  }
  0x13   :  { %615 = vsyncadd [#allocation4], 4294963200  ;;  %v57_v0 = vld [vmem:[#allocation3 + $0x80] sm:$0xff]  ;;  %v73_v1 = vld [vmem:[#allocation3 + $0x88] sm:$0xff]  ;;  %v621_v51 = vmov 0.0|0.0   ;;  %vm622_vm0 = vmmov 0  }
  0x14   :  { %v49_v2 = vld [vmem:[#allocation3] sm:$0xff]  ;;  %v89_v3 = vadd.f32 %v73_v1, %v57_v0  ;;  %v65_v4 = vld [vmem:[#allocation3 + $0x8] sm:$0xff]  ;;  %v58_v5 = vld [vmem:[#allocation3 + $0x90] sm:$0xff]  ;;  %547 = vmatprep.subr.bf16.mxu0 %v621_v51  ;;  %v623_v61 = vmov 0.0   ;;  %vm248_vm1 = vcmask 130112   ;;  %vm255_vm2 = vcmask 195712  }
  0x15   :  { %v74_v6 = vld [vmem:[#allocation3 + $0x98] sm:$0xff]  ;;  %v81_v7 = vadd.f32 %v65_v4, %v49_v2  ;;  %v50_v8 = vld [vmem:[#allocation3 + $0x10] sm:$0xff]  ;;  %v59_v12 = vld [vmem:[#allocation3 + $0xa0] sm:$0xff]  ;;  %539 = vmatprep.mubr.msk.f32.mxu0 %vm622_vm0, %v623_v61  ;;  %542 = vmatprep.subr.mxu1 %v623_v61  ;;  %v237_v2 = vlaneseq  ;;  %vm262_vm3 = vcmask 261312   ;;  %vm269_vm4 = vcmask 326912   ;;  %s624_s15 = smov [#allocation6]  }
  0x16   :  { %v66_v9 = vld [vmem:[#allocation3 + $0x18] sm:$0xff]  ;;  %180 = vadd.xlane.f32.xlu1 %v89_v3  ;;  %v90_v10 = vadd.f32 %v74_v6, %v58_v5  ;;  %v75_v13 = vld [vmem:[#allocation3 + $0xa8] sm:$0xff]  ;;  %v51_v14 = vld [vmem:[#allocation3 + $0x20] sm:$0xff]  ;;  %544 = vmatprep.mubr.msk.f32.mxu1 %vm622_vm0, %v623_v61  ;;  %vm276_vm5 = vcmask 392512   ;;  %vm283_vm6 = vcmask 458112   ;;  %vm290_vm7 = vcmask 523712  }
  0x17   :  { %164 = vadd.xlane.f32.xlu0 %v81_v7  ;;  %v82_v11 = vadd.f32 %v66_v9, %v50_v8  ;;  %v67_v15 = vld [vmem:[#allocation3 + $0x28] sm:$0xff]  ;;  %v91_v16 = vadd.f32 %v75_v13, %v59_v12  ;;  %v60_v18 = vld [vmem:[#allocation3 + $0xb0] sm:$0xff]  ;;  %v76_v19 = vld [vmem:[#allocation3 + $0xb8] sm:$0xff]  ;;  %v238_v5 = vand.u32 127, %v237_v2  ;;  %v240_v7 = vshrl.u32 %v237_v2, 7  ;;  %s499_s16 = sshll.u32 %s624_s15, 4  ;;  %s500_s16 = int_to_ptr.vmem [resolvable:$true] %s499_s16 }
  0x18   :  { %v83_v17 = vadd.f32 %v67_v15, %v51_v14  ;;  %v52_v20 = vld [vmem:[#allocation3 + $0x30] sm:$0xff]  ;;  %v68_v21 = vld [vmem:[#allocation3 + $0x38] sm:$0xff]  ;;  %v92_v22 = vadd.f32 %v76_v19, %v60_v18  ;;  %v61_v24 = vld [vmem:[#allocation3 + $0xc0] sm:$0xff]  ;;  %vm331_vm8 = vcmask 1041409   ;;  %vm333_vm9 = vcmask 523264   ;;  %p597_p9 = scmp.lt.s32.totalorder %s500_s16, %s500_s16 }
  0x19   :  { %v84_v23 = vadd.f32 %v68_v21, %v52_v20  ;;  %v77_v25 = vld [vmem:[#allocation3 + $0xc8] sm:$0xff]  ;;  %v53_v26 = vld [vmem:[#allocation3 + $0x40] sm:$0xff]  ;;  %v62_v30 = vld [vmem:[#allocation3 + $0xd0] sm:$0xff]  ;;  %v243_v9 = vadd.s32 4294967288, %v238_v5  ;;  %v264_v12 = vadd.s32 4294967264, %v238_v5  ;;  %v271_v14 = vadd.s32 4294967256, %v238_v5 }
  0x1a   :  { %182 = vadd.xlane.f32.xlu1 %v90_v10  ;;  %v69_v27 = vld [vmem:[#allocation3 + $0x48] sm:$0xff]  ;;  %v93_v28 = vadd.f32 %v77_v25, %v61_v24  ;;  %v78_v31 = vld [vmem:[#allocation3 + $0xd8] sm:$0xff]  ;;  %v54_v32 = vld [vmem:[#allocation3 + $0x50] sm:$0xff]  ;;  %v250_v10 = vadd.s32 4294967280, %v238_v5  ;;  %v241_v15 = vsub.s32 %v238_v5, %v240_v7  ;;  %v278_v19 = vadd.s32 4294967248, %v238_v5 }
  0x1b   :  { %166 = vadd.xlane.f32.xlu0 %v82_v11  ;;  %v85_v29 = vadd.f32 %v69_v27, %v53_v26  ;;  %v70_v33 = vld [vmem:[#allocation3 + $0x58] sm:$0xff]  ;;  %v94_v34 = vadd.f32 %v78_v31, %v62_v30  ;;  %v63_v36 = vld [vmem:[#allocation3 + $0xe0] sm:$0xff]  ;;  %v79_v37 = vld [vmem:[#allocation3 + $0xe8] sm:$0xff]  ;;  %v257_v11 = vadd.s32 4294967272, %v238_v5  ;;  %v274_v25 = vsub.s32 %v271_v14, %v240_v7 }
  0x1c   :  { %v86_v35 = vadd.f32 %v70_v33, %v54_v32  ;;  %v55_v38 = vld [vmem:[#allocation3 + $0x60] sm:$0xff]  ;;  %v71_v39 = vld [vmem:[#allocation3 + $0x68] sm:$0xff]  ;;  %v95_v40 = vadd.f32 %v79_v37, %v63_v36  ;;  %v64_v42 = vld [vmem:[#allocation3 + $0xf0] sm:$0xff]  ;;  %v253_v18 = vsub.s32 %v250_v10, %v240_v7  ;;  %vm411_vm10 = vcmask 1043456  }
  0x1d   :  { %v87_v41 = vadd.f32 %v71_v39, %v55_v38  ;;  %v80_v43 = vld [vmem:[#allocation3 + $0xf8] sm:$0xff]  ;;  %v56_v44 = vld [vmem:[#allocation3 + $0x70] sm:$0xff]  ;;  %v212_v48 = vld [vmem:[%s709_s1] sm:$0xff]  ;;  %v260_v21 = vsub.s32 %v257_v11, %v240_v7  ;;  %v285_v38 = vadd.s32 4294967240, %v238_v5  ;;  %vm407_vm11 = vcmask 31744  }
  0x1e   :  { %184 = vadd.xlane.f32.xlu1 %v91_v16  ;;  %v72_v45 = vld [vmem:[#allocation3 + $0x78] sm:$0xff]  ;;  %v96_v46 = vadd.f32 %v80_v43, %v64_v42  ;;  %v213_v49 = vld [vmem:[%s709_s1 + $0x8] sm:$0xff]  ;;  %v214_v52 = vld [vmem:[%s709_s1 + $0x10] sm:$0xff]  ;;  %vm491_vm12 = vcmask 517120  }
  0x1f   :  { %168 = vadd.xlane.f32.xlu0 %v83_v17  ;;  %v88_v47 = vadd.f32 %v72_v45, %v56_v44  ;;  %v548_v50 = vpack.c.bf16 %v213_v49, %v212_v48  ;;  %v215_v53 = vld [vmem:[%s709_s1 + $0x18] sm:$0xff]  ;;  %v216_v55 = vld [vmem:[%s709_s1 + $0x20] sm:$0xff]  ;;  %v217_v56 = vld [vmem:[%s709_s1 + $0x28] sm:$0xff]  ;;  %v246_v17 = vsub.s32 %v243_v9, %v240_v7 }
  0x20   :  { %v551_v54 = vpack.c.bf16 %v215_v53, %v214_v52  ;;  %v554_v57 = vpack.c.bf16 %v217_v56, %v216_v55  ;;  %v218_v58 = vld [vmem:[%s709_s1 + $0x30] sm:$0xff]  ;;  %v219_v59 = vld [vmem:[%s709_s1 + $0x38] sm:$0xff]  ;;  %v288_v55 = vsub.s32 %v285_v38, %v240_v7 }
  0x21   :  { %549 = vmatpush3.bf16.msra.mxu0 %v548_v50  ;;  %v557_v60 = vpack.c.bf16 %v219_v59, %v218_v58 }
  0x22   :  { %186 = vadd.xlane.f32.xlu1 %v92_v22  ;;  %550 = vmatprep.subr.bf16.mxu0 %v621_v51  ;;  %v267_v22 = vsub.s32 %v264_v12, %v240_v7 }
  0x23   :  { %170 = vadd.xlane.f32.xlu0 %v84_v23 }
  0x25   :  { %552 = vmatpush3.bf16.msra.mxu0 %v551_v54 }
  0x26   :  { %188 = vadd.xlane.f32.xlu1 %v93_v28  ;;  %553 = vmatprep.subr.bf16.mxu0 %v621_v51 }
  0x27   :  { %172 = vadd.xlane.f32.xlu0 %v85_v29 }
  0x29   :  { %555 = vmatpush3.bf16.msra.mxu0 %v554_v57 }
  0x2a   :  { %190 = vadd.xlane.f32.xlu1 %v94_v34  ;;  %556 = vmatprep.subr.bf16.mxu0 %v621_v51  ;;  %v281_v34 = vsub.s32 %v278_v19, %v240_v7 }
  0x2b   :  { %174 = vadd.xlane.f32.xlu0 %v86_v35 }
  0x2d   :  { %558 = vmatpush3.bf16.msra.mxu0 %v557_v60 }
  0x2e   :  { %192 = vadd.xlane.f32.xlu1 %v95_v40 }
  0x2f   :  { %176 = vadd.xlane.f32.xlu0 %v87_v41 }
  0x32   :  { %194 = vadd.xlane.f32.xlu1 %v96_v46 }
  0x33   :  { %178 = vadd.xlane.f32.xlu0 %v88_v47 }
  0xa3   :  { %v181_v62 = vpop.xlane.xlu1 %180 }
  0xa4   :  { %v165_v63 = vpop.xlane.xlu0 %164  ;;  %v204_v27 = vmul.f32 0.00390625, %v181_v62 }
  0xa5   :  { %v196_v31 = vmul.f32 0.00390625, %v165_v63 }
  0xa6   :  { %v295_v43 = vrot.slane %v204_v27, %v241_v15 }
  0xa7   :  { %v183_v0 = vpop.xlane.xlu1 %182  ;;  %v242_v48 = vrot.slane %v196_v31, %v241_v15  ;;  %v220_v15 = vld [vmem:[%s710_s2] sm:$0xf]  ;;  %s592_s2 = scalar_lea.vmem %s500_s16, 32 }
  0xa8   :  { %v167_v1 = vpop.xlane.xlu0 %166  ;;  %v205_v20 = vmul.f32 0.00390625, %v183_v0  ;;  %543 = vmatpush3.msk.msra.mxu1 %vm411_vm10, %v220_v15  ;;  %p593_p8 = scmp.ne.s32.totalorder %s500_s16, %s592_s2  ;;  %p598_p10 = scmp.lt.s32.totalorder %s592_s2, %s592_s2 }
  0xa9   :  { %v197_v23 = vmul.f32 0.00390625, %v167_v1 }
  0xaa   :  { %v299_v35 = vrot.slane %v205_v20, %v246_v17  ;;  %p599_p11 = por %p598_p10, %p597_p9 }
  0xab   :  { %v185_v3 = vpop.xlane.xlu1 %184  ;;  %v247_v39 = vrot.slane %v197_v23, %v246_v17 }
  0xac   :  { %v169_v4 = vpop.xlane.xlu0 %168  ;;  %v206_v24 = vmul.f32 0.00390625, %v185_v3  ;;  %v300_v52 = vsel %vm248_vm1, %v299_v35, %v295_v43  ;;  %p600_p12 = pnand %p599_p11, %p593_p8 }
  0xad   :  { %v198_v28 = vmul.f32 0.00390625, %v169_v4  ;;  %v249_v56 = vsel %vm248_vm1, %v247_v39, %v242_v48 }
  0xae   :  { %v304_v40 = vrot.slane %v206_v24, %v253_v18 }
  0xaf   :  { %v187_v6 = vpop.xlane.xlu1 %186  ;;  %v254_v44 = vrot.slane %v198_v28, %v253_v18 }
  0xb0   :  { %v171_v8 = vpop.xlane.xlu0 %170  ;;  %v207_v29 = vmul.f32 0.00390625, %v187_v6  ;;  %v305_v57 = vsel %vm255_vm2, %v304_v40, %v300_v52 }
  0xb1   :  { %v199_v32 = vmul.f32 0.00390625, %v171_v8  ;;  %v256_v61 = vsel %vm255_vm2, %v254_v44, %v249_v56 }
  0xb2   :  { %v309_v45 = vrot.slane %v207_v29, %v260_v21 }
  0xb3   :  { %v189_v13 = vpop.xlane.xlu1 %188  ;;  %v261_v49 = vrot.slane %v199_v32, %v260_v21 }
  0xb4   :  { %v173_v16 = vpop.xlane.xlu0 %172  ;;  %v208_v33 = vmul.f32 0.00390625, %v189_v13  ;;  %v310_v62 = vsel %vm262_vm3, %v309_v45, %v305_v57 }
  0xb5   :  { %v200_v36 = vmul.f32 0.00390625, %v173_v16  ;;  %v263_v2 = vsel %vm262_vm3, %v261_v49, %v256_v61 }
  0xb6   :  { %v314_v50 = vrot.slane %v208_v33, %v267_v22 }
  0xb7   :  { %v191_v26 = vpop.xlane.xlu1 %190  ;;  %v268_v53 = vrot.slane %v200_v36, %v267_v22 }
  0xb8   :  { %v175_v30 = vpop.xlane.xlu0 %174  ;;  %v209_v37 = vmul.f32 0.00390625, %v191_v26  ;;  %v315_v3 = vsel %vm269_vm4, %v314_v50, %v310_v62 }
  0xb9   :  { %v201_v41 = vmul.f32 0.00390625, %v175_v30  ;;  %v270_v5 = vsel %vm269_vm4, %v268_v53, %v263_v2 }
  0xba   :  { %v319_v54 = vrot.slane %v209_v37, %v274_v25 }
  0xbb   :  { %v193_v42 = vpop.xlane.xlu1 %192  ;;  %v275_v58 = vrot.slane %v201_v41, %v274_v25 }
  0xbc   :  { %v210_v46 = vmul.f32 0.00390625, %v193_v42  ;;  %v177_v47 = vpop.xlane.xlu0 %176  ;;  %v320_v6 = vsel %vm276_vm5, %v319_v54, %v315_v3 }
  0xbd   :  { %v202_v51 = vmul.f32 0.00390625, %v177_v47  ;;  %v277_v8 = vsel %vm276_vm5, %v275_v58, %v270_v5 }
  0xbe   :  { %v324_v59 = vrot.slane %v210_v46, %v281_v34 }
  0xbf   :  { %v195_v60 = vpop.xlane.xlu1 %194  ;;  %v282_v63 = vrot.slane %v202_v51, %v281_v34 }
  0xc0   :  { %v211_v0 = vmul.f32 0.00390625, %v195_v60  ;;  %v179_v1 = vpop.xlane.xlu0 %178  ;;  %v325_v9 = vsel %vm283_vm6, %v324_v59, %v320_v6 }
  0xc1   :  { %v203_v4 = vmul.f32 0.00390625, %v179_v1  ;;  %v284_v11 = vsel %vm283_vm6, %v282_v63, %v277_v8 }
  0xc2   :  { %v329_v7 = vrot.slane %v211_v0, %v288_v55 }
  0xc3   :  { %v289_v10 = vrot.slane %v203_v4, %v288_v55 }
  0xc4   :  { %v330_v12 = vsel %vm290_vm7, %v329_v7, %v325_v9 }
  0xc5   :  { %v291_v13 = vsel %vm290_vm7, %v289_v10, %v284_v11 }
  0xc6   :  { %v332_v14 = vsel %vm331_vm8, %v330_v12, %v291_v13 }
  0xc7   :  { %540 = vmatmul.mubr.msk.f32.vlgmr.msra.gmra.mrb[0].mxu0 %vm333_vm9, %v332_v14 }
 0x19a   :  { %v402_v16 = vpop.f32.mrb[0].mxu0 }
 0x19b   :  { %v406_v17 = vmax.f32 %v402_v16, 0.0  ;;  %v541_v18 = vpop.f32.mrb[1].mxu0 }
 0x19d   :  { %545 = vmatmul.mubr.msk.f32.vlgmr.msra.gmra.mrb[0].mxu1 %vm407_vm11, %v406_v17 }
 0x270   :  { %v481_v19 = vpop.f32.mrb[0].mxu1 }
 0x271   :  { %v511_v20 = vmul.f32 -1.442695, %v481_v19  ;;  %v546_v21 = vpop.f32.mrb[1].mxu1 }
 0x273   :  { %566 = vpow2.f32 %v511_v20 }
 0x27d   :  { %v567_v22 = vpop.eup %566 }
 0x27e   :  { %v488_v23 = vadd.f32 1.0, %v567_v22 }
 0x280   :  { %568 = vrcp.f32 %v488_v23 }
 0x28a   :  { %v569_v24 = vpop.eup %568 }
 0x28b   :  { %492 = vst.msk [vmem:[#allocation6] sm:$0x3] %vm491_vm12, %v569_v24 }
 0x28c   :  { %603 = shalt.err (!%p600_p12)
}
 0x28d   :  { %s604_s19 = scalar_lea.hbm %s711_s3, 32 }
 0x28e   :  { %p605_p13 = scmp.ne.s32.totalorder %s711_s3, %s604_s19  ;;  %p608_p0 = scmp.lt.u32.totalorder %s604_s19, %s711_s3 }
 0x290   :  { %p610_p1 = pnand %p608_p0, %p605_p13 }
 0x292   :  { %613 = shalt.err (!%p610_p1)
}
 0x293   :  { %502 = dma.vmem_to_hbm [thread:$0]  %s500_s16, 32, %s711_s3, [#allocation5]  }
 0x294   :  { %616 = dma.done.wait [#allocation5], 32  }
 0x295   :  { %617 = vsyncadd [#allocation5], 4294967264 }
 0x296   :  { %506 = vsyncpa [#allocation4], 1 }
 0x297   :  { %507 = vsyncpa [#allocation5], 1 }

</bundles_post_ra>
